<compile_context>
chip_gen: v6e
topology: v6e:2x2x1
jax: 0.10.0
libtpu: 0.0.40
codegen_flags: <defaults>
</compile_context>

<pallas_src>
import jax
import jax.numpy as jnp
import numpy as np
from jax.experimental import pallas as pl
from jax.experimental.pallas import tpu as pltpu


def _attn_kernel(x_ref, vm_ref, wke_ref, bke_ref, w1_ref, b1_ref,
                 w2_ref, b2_ref, wf_ref, bf_ref, out_ref):
    TB, V = vm_ref.shape          # batch tile, visits in the window
    K = w1_ref.shape[1]           # key_dim
    H = w1_ref.shape[2]           # hidden_dim
    E = wf_ref.shape[0]           # embedding_dim

    # ---- fused fc_key | fc_embed projection: ONE MXU matmul over all rows ----
    xke = jnp.dot(x_ref[...], wke_ref[...],
                  preferred_element_type=jnp.float32) + bke_ref[...]    # (TB*V, K+E)
    # free leading-dim split (last dim unchanged, V % 8 == 0): per-visit view
    x3 = xke.reshape(TB, V, K + E)                                       # (TB, V, K+E)

    # ---- fc_score_1: x_key_flatten @ W1^T == sum_v x_key[:, v, :] @ W1_r[v] ----
    acc = jnp.zeros((TB, H), jnp.float32)
    for v in range(V):
        acc = acc + jnp.dot(x3[:, v, :K], w1_ref[v],
                            preferred_element_type=jnp.float32)          # (TB, H)
    s1 = jnp.maximum(acc + b1_ref[...], 0.0)                             # relu

    # ---- fc_score_2 + relu + masked softmax over visits ----
    s2 = jnp.dot(s1, w2_ref[...], preferred_element_type=jnp.float32) + b2_ref[...]
    s2 = jnp.maximum(s2, 0.0)                                            # (TB, V)
    s2 = jnp.where(vm_ref[...] > 0.5, s2, -1000000000.0)
    mx = jnp.max(s2, axis=-1, keepdims=True)
    e = jnp.exp(s2 - mx)
    scores = e / jnp.sum(e, axis=-1, keepdims=True)                      # (TB, V)

    # ---- attention pooling over the embed half (kept as a VMEM value) ----
    pooled = jnp.zeros((TB, E), jnp.float32)
    for v in range(V):
        pooled = pooled + scores[:, v:v + 1] * x3[:, v, K:]              # (TB, E)

    # ---- final fc + sigmoid ----
    logit = jnp.dot(pooled, wf_ref[...],
                    preferred_element_type=jnp.float32) + bf_ref[...]    # (TB, 1)
    out_ref[...] = jax.nn.sigmoid(logit)


def simple_attn_r2_pallas(x, masks, params, window_size, b_tile=512):
    """Pallas implementation of SimpleAttnR2.forward. Returns shape (B,).

    b_tile: batch rows per grid step (default 512; sweep 512-1024 on real
    workloads).  It is clamped to the padded batch and to a VMEM budget so the
    double-buffered x tile stays well under the scoped VMEM limit.
    """
    if x.shape[1] > window_size:
        x = x[:, :window_size, :]
        masks = masks[:, :window_size, :]
    B, V, D = x.shape
    wk, bk, w1, b1, w2, b2, we, be, wf, bf = params   # PyTorch (out, in) layout
    K = wk.shape[0]
    H = w1.shape[0]
    E = we.shape[0]
    assert w1.shape[1] == V * K, "number of visits must equal window_size"

    # ---- one-time weight glue (plain XLA ops, outside the kernel) ----
    w_ke = jnp.concatenate([wk.T, we.T], axis=1).astype(jnp.float32)       # (D, K+E)
    b_ke = jnp.concatenate([bk, be]).reshape(1, K + E).astype(jnp.float32)
    w1_r = jnp.reshape(w1.T, (V, K, H)).astype(jnp.float32)                # (V, K, H)
    b1_r = b1.reshape(1, H).astype(jnp.float32)
    w2_t = w2.T.astype(jnp.float32)                                        # (H, V)
    b2_r = b2.reshape(1, V).astype(jnp.float32)
    wf_t = wf.T.astype(jnp.float32)                                        # (E, 1)
    bf_r = bf.reshape(1, 1).astype(jnp.float32)

    # visit mask reduced to (B, V) outside the kernel (cuts mask DMA by D x)
    vm = (jnp.sum(masks, axis=-1) != 0).astype(jnp.float32)

    # ---- batch tiling (TB multiple of 8; x tile capped at ~8 MiB of VMEM) ----
    def _round_up(a, m):
        return ((a + m - 1) // m) * m

    lane_d = _round_up(max(D, 1), 128)
    vmem_cap_rows = max(8, ((8 << 20) // (2 * V * lane_d * 4)) // 8 * 8)
    TB = min(b_tile, _round_up(B, 8), vmem_cap_rows)
    TB = max(8, (TB // 8) * 8)
    Bp = _round_up(B, TB)

    x = x.astype(jnp.float32)                  # no-op for f32 inputs; no bf16 cast
    if Bp != B:
        x = jnp.pad(x, ((0, Bp - B), (0, 0), (0, 0)))
        vm = jnp.pad(vm, ((0, Bp - B), (0, 0)))
    xf = x.reshape(Bp * V, D)                  # metadata-only; stays batch-major

    out = pl.pallas_call(
        _attn_kernel,
        out_shape=jax.ShapeDtypeStruct((Bp, 1), jnp.float32),
        grid_spec=pltpu.PrefetchScalarGridSpec(
            num_scalar_prefetch=0,
            grid=(Bp // TB,),
            in_specs=[
                pl.BlockSpec((TB * V, D), lambda b: (b, 0)),       # x rows for tile b
                pl.BlockSpec((TB, V), lambda b: (b, 0)),           # visit mask
                pl.BlockSpec((D, K + E), lambda b: (0, 0)),        # fused W_key|W_embed
                pl.BlockSpec((1, K + E), lambda b: (0, 0)),        # fused biases
                pl.BlockSpec((V, K, H), lambda b: (0, 0, 0)),      # W_score1 per-visit
                pl.BlockSpec((1, H), lambda b: (0, 0)),            # b_score1
                pl.BlockSpec((H, V), lambda b: (0, 0)),            # W_score2^T
                pl.BlockSpec((1, V), lambda b: (0, 0)),            # b_score2
                pl.BlockSpec((E, 1), lambda b: (0, 0)),            # W_fc^T
                pl.BlockSpec((1, 1), lambda b: (0, 0)),            # b_fc
            ],
            out_specs=pl.BlockSpec((TB, 1), lambda b: (b, 0)),
        ),
        compiler_params=pltpu.CompilerParams(
            dimension_semantics=("parallel",)),                    # megacore on v7x
    )(xf, vm, w_ke, b_ke, w1_r, b1_r, w2_t, b2_r, wf_t, bf_r)
    return out[:B, 0]


def simple_attn_r2_ref(x, masks, params, window_size):
    """Plain-JAX reference matching the PyTorch forward exactly."""
    if x.shape[1] > window_size:
        x = x[:, :window_size, :]
        masks = masks[:, :window_size, :]
    wk, bk, w1, b1, w2, b2, we, be, wf, bf = params
    xk = x @ wk.T + bk
    xkf = xk.reshape(x.shape[0], -1)
    s = jax.nn.relu(xkf @ w1.T + b1)
    s = jax.nn.relu(s @ w2.T + b2)
    xe = x @ we.T + be
    vm = jnp.sum(masks, -1) != 0
    s = jnp.where(vm, s, -1000000000.0)
    sc = jax.nn.softmax(s, axis=-1)
    pooled = jnp.einsum('bve,bv->be', xe, sc)
    return jax.nn.sigmoid(pooled @ wf.T + bf)[:, 0]


def _linear_params(key, out_dim, in_dim):
    """Deterministic nn.Linear-style init: U(-1/sqrt(in), 1/sqrt(in))."""
    k1, k2 = jax.random.split(key)
    bound = 1.0 / np.sqrt(in_dim)
    w = jax.random.uniform(k1, (out_dim, in_dim), jnp.float32, -bound, bound)
    b = jax.random.uniform(k2, (out_dim,), jnp.float32, -bound, bound)
    return w, b


if __name__ == "__main__":
    # small shapes consistent with the module's forward
    B = 2            # batch
    V = 8            # window_size == number of visits (fc_score_1 requires this)
    D = 24           # input_dim (# diagnosis codes - 1)
    K = 16           # key_dim
    E = 16           # embedding_dim
    H = 32           # hidden_dim

    root = jax.random.PRNGKey(0)
    kx, km, k1, k2, k3, k4, k5 = jax.random.split(root, 7)

    # multi-hot style inputs
    x = jax.random.bernoulli(kx, 0.3, (B, V, D)).astype(jnp.float32)
    masks = jax.random.bernoulli(km, 0.5, (B, V, D)).astype(jnp.float32)
    # force some fully-padded visits so the masked softmax path is exercised
    masks = masks.at[0, -2:, :].set(0.0)
    masks = masks.at[1, -1:, :].set(0.0)

    params = (
        *_linear_params(k1, K, D),       # fc_key
        *_linear_params(k2, H, V * K),   # fc_score_1
        *_linear_params(k3, V, H),       # fc_score_2
        *_linear_params(k4, E, D),       # fc_embed
        *_linear_params(k5, 1, E),       # fc
    )

    out = simple_attn_r2_pallas(x, masks, params, window_size=V)
    out = jax.block_until_ready(out)

    ref = simple_attn_r2_ref(x, masks, params, window_size=V)
    np.testing.assert_allclose(np.asarray(out), np.asarray(ref),
                               rtol=1e-5, atol=1e-5)
    print("KERNEL_OK")
</pallas_src>

<mosaic_0001>
module attributes {stable_mosaic.version = 11 : i64} {
  func.func @_attn_kernel(%arg0: i32, %arg1: memref<64x24xf32, #tpu.memory_space<vmem>>, %arg2: memref<8x8xf32, #tpu.memory_space<vmem>>, %arg3: memref<24x32xf32, #tpu.memory_space<vmem>>, %arg4: memref<1x32xf32, #tpu.memory_space<vmem>>, %arg5: memref<8x16x32xf32, #tpu.memory_space<vmem>>, %arg6: memref<1x32xf32, #tpu.memory_space<vmem>>, %arg7: memref<32x8xf32, #tpu.memory_space<vmem>>, %arg8: memref<1x8xf32, #tpu.memory_space<vmem>>, %arg9: memref<16x1xf32, #tpu.memory_space<vmem>>, %arg10: memref<1x1xf32, #tpu.memory_space<vmem>>, %arg11: memref<8x1xf32, #tpu.memory_space<vmem>>) attributes {dimension_semantics = [#tpu.dimension_semantics<parallel>], iteration_bounds = array<i64: 1>, scalar_prefetch = 0 : i64, scratch_operands = 0 : i64, tpu.core_type = #tpu.core_type<tc>, window_params = [{transform_indices = @transform_0, window_bounds = array<i64: 64, 24>}, {transform_indices = @transform_1, window_bounds = array<i64: 8, 8>}, {pipeline_mode = #tpu.pipeline_mode<synchronous>, transform_indices = @transform_2, window_bounds = array<i64: 24, 32>}, {pipeline_mode = #tpu.pipeline_mode<synchronous>, transform_indices = @transform_3, window_bounds = array<i64: 1, 32>}, {pipeline_mode = #tpu.pipeline_mode<synchronous>, transform_indices = @transform_4, window_bounds = array<i64: 8, 16, 32>}, {pipeline_mode = #tpu.pipeline_mode<synchronous>, transform_indices = @transform_5, window_bounds = array<i64: 1, 32>}, {pipeline_mode = #tpu.pipeline_mode<synchronous>, transform_indices = @transform_6, window_bounds = array<i64: 32, 8>}, {pipeline_mode = #tpu.pipeline_mode<synchronous>, transform_indices = @transform_7, window_bounds = array<i64: 1, 8>}, {pipeline_mode = #tpu.pipeline_mode<synchronous>, transform_indices = @transform_8, window_bounds = array<i64: 16, 1>}, {pipeline_mode = #tpu.pipeline_mode<synchronous>, transform_indices = @transform_9, window_bounds = array<i64: 1, 1>}, {transform_indices = @transform_10, window_bounds = array<i64: 8, 1>}]} {
    %c0 = arith.constant 0 : index
    %c0_0 = arith.constant 0 : index
    %0 = vector.load %arg1[%c0, %c0_0] : memref<64x24xf32, #tpu.memory_space<vmem>>, vector<64x24xf32>
    %c0_1 = arith.constant 0 : index
    %c0_2 = arith.constant 0 : index
    %1 = vector.load %arg3[%c0_1, %c0_2] : memref<24x32xf32, #tpu.memory_space<vmem>>, vector<24x32xf32>
    %cst = arith.constant dense<0.000000e+00> : vector<64x32xf32>
    %2 = tpu.matmul %0, %1, %cst {dimension_numbers = #tpu.dot_dimension_numbers<[1], [0], [0], [1], [0, 0, 1, 1], [], []>} : vector<64x24xf32>, vector<24x32xf32>, vector<64x32xf32> -> vector<64x32xf32>
    %c0_3 = arith.constant 0 : index
    %c0_4 = arith.constant 0 : index
    %3 = vector.load %arg4[%c0_3, %c0_4] : memref<1x32xf32, #tpu.memory_space<vmem>>, vector<1x32xf32>
    %4 = vector.broadcast %3 : vector<1x32xf32> to vector<64x32xf32>
    %5 = arith.addf %2, %4 : vector<64x32xf32>
    %6 = vector.shape_cast %5 : vector<64x32xf32> to vector<8x8x32xf32>
    %cst_5 = arith.constant 0.000000e+00 : f32
    %7 = vector.broadcast %cst_5 : f32 to vector<8x32xf32>
    %8 = vector.extract_strided_slice %6 {offsets = [0, 0, 0], sizes = [8, 1, 16], strides = [1, 1, 1]} : vector<8x8x32xf32> to vector<8x1x16xf32>
    %9 = vector.shape_cast %8 : vector<8x1x16xf32> to vector<8x16xf32>
    %c0_6 = arith.constant 0 : index
    %c0_7 = arith.constant 0 : index
    %c0_8 = arith.constant 0 : index
    %10 = vector.load %arg5[%c0_6, %c0_7, %c0_8] : memref<8x16x32xf32, #tpu.memory_space<vmem>>, vector<1x16x32xf32>
    %11 = vector.shape_cast %10 : vector<1x16x32xf32> to vector<16x32xf32>
    %cst_9 = arith.constant dense<0.000000e+00> : vector<8x32xf32>
    %12 = tpu.matmul %9, %11, %cst_9 {dimension_numbers = #tpu.dot_dimension_numbers<[1], [0], [0], [1], [0, 0, 1, 1], [], []>} : vector<8x16xf32>, vector<16x32xf32>, vector<8x32xf32> -> vector<8x32xf32>
    %13 = arith.addf %7, %12 : vector<8x32xf32>
    %14 = vector.extract_strided_slice %6 {offsets = [0, 1, 0], sizes = [8, 1, 16], strides = [1, 1, 1]} : vector<8x8x32xf32> to vector<8x1x16xf32>
    %15 = vector.shape_cast %14 : vector<8x1x16xf32> to vector<8x16xf32>
    %c1 = arith.constant 1 : index
    %c0_10 = arith.constant 0 : index
    %c0_11 = arith.constant 0 : index
    %16 = vector.load %arg5[%c1, %c0_10, %c0_11] : memref<8x16x32xf32, #tpu.memory_space<vmem>>, vector<1x16x32xf32>
    %17 = vector.shape_cast %16 : vector<1x16x32xf32> to vector<16x32xf32>
    %cst_12 = arith.constant dense<0.000000e+00> : vector<8x32xf32>
    %18 = tpu.matmul %15, %17, %cst_12 {dimension_numbers = #tpu.dot_dimension_numbers<[1], [0], [0], [1], [0, 0, 1, 1], [], []>} : vector<8x16xf32>, vector<16x32xf32>, vector<8x32xf32> -> vector<8x32xf32>
    %19 = arith.addf %13, %18 : vector<8x32xf32>
    %20 = vector.extract_strided_slice %6 {offsets = [0, 2, 0], sizes = [8, 1, 16], strides = [1, 1, 1]} : vector<8x8x32xf32> to vector<8x1x16xf32>
    %21 = vector.shape_cast %20 : vector<8x1x16xf32> to vector<8x16xf32>
    %c2 = arith.constant 2 : index
    %c0_13 = arith.constant 0 : index
    %c0_14 = arith.constant 0 : index
    %22 = vector.load %arg5[%c2, %c0_13, %c0_14] : memref<8x16x32xf32, #tpu.memory_space<vmem>>, vector<1x16x32xf32>
    %23 = vector.shape_cast %22 : vector<1x16x32xf32> to vector<16x32xf32>
    %cst_15 = arith.constant dense<0.000000e+00> : vector<8x32xf32>
    %24 = tpu.matmul %21, %23, %cst_15 {dimension_numbers = #tpu.dot_dimension_numbers<[1], [0], [0], [1], [0, 0, 1, 1], [], []>} : vector<8x16xf32>, vector<16x32xf32>, vector<8x32xf32> -> vector<8x32xf32>
    %25 = arith.addf %19, %24 : vector<8x32xf32>
    %26 = vector.extract_strided_slice %6 {offsets = [0, 3, 0], sizes = [8, 1, 16], strides = [1, 1, 1]} : vector<8x8x32xf32> to vector<8x1x16xf32>
    %27 = vector.shape_cast %26 : vector<8x1x16xf32> to vector<8x16xf32>
    %c3 = arith.constant 3 : index
    %c0_16 = arith.constant 0 : index
    %c0_17 = arith.constant 0 : index
    %28 = vector.load %arg5[%c3, %c0_16, %c0_17] : memref<8x16x32xf32, #tpu.memory_space<vmem>>, vector<1x16x32xf32>
    %29 = vector.shape_cast %28 : vector<1x16x32xf32> to vector<16x32xf32>
    %cst_18 = arith.constant dense<0.000000e+00> : vector<8x32xf32>
    %30 = tpu.matmul %27, %29, %cst_18 {dimension_numbers = #tpu.dot_dimension_numbers<[1], [0], [0], [1], [0, 0, 1, 1], [], []>} : vector<8x16xf32>, vector<16x32xf32>, vector<8x32xf32> -> vector<8x32xf32>
    %31 = arith.addf %25, %30 : vector<8x32xf32>
    %32 = vector.extract_strided_slice %6 {offsets = [0, 4, 0], sizes = [8, 1, 16], strides = [1, 1, 1]} : vector<8x8x32xf32> to vector<8x1x16xf32>
    %33 = vector.shape_cast %32 : vector<8x1x16xf32> to vector<8x16xf32>
    %c4 = arith.constant 4 : index
    %c0_19 = arith.constant 0 : index
    %c0_20 = arith.constant 0 : index
    %34 = vector.load %arg5[%c4, %c0_19, %c0_20] : memref<8x16x32xf32, #tpu.memory_space<vmem>>, vector<1x16x32xf32>
    %35 = vector.shape_cast %34 : vector<1x16x32xf32> to vector<16x32xf32>
    %cst_21 = arith.constant dense<0.000000e+00> : vector<8x32xf32>
    %36 = tpu.matmul %33, %35, %cst_21 {dimension_numbers = #tpu.dot_dimension_numbers<[1], [0], [0], [1], [0, 0, 1, 1], [], []>} : vector<8x16xf32>, vector<16x32xf32>, vector<8x32xf32> -> vector<8x32xf32>
    %37 = arith.addf %31, %36 : vector<8x32xf32>
    %38 = vector.extract_strided_slice %6 {offsets = [0, 5, 0], sizes = [8, 1, 16], strides = [1, 1, 1]} : vector<8x8x32xf32> to vector<8x1x16xf32>
    %39 = vector.shape_cast %38 : vector<8x1x16xf32> to vector<8x16xf32>
    %c5 = arith.constant 5 : index
    %c0_22 = arith.constant 0 : index
    %c0_23 = arith.constant 0 : index
    %40 = vector.load %arg5[%c5, %c0_22, %c0_23] : memref<8x16x32xf32, #tpu.memory_space<vmem>>, vector<1x16x32xf32>
    %41 = vector.shape_cast %40 : vector<1x16x32xf32> to vector<16x32xf32>
    %cst_24 = arith.constant dense<0.000000e+00> : vector<8x32xf32>
    %42 = tpu.matmul %39, %41, %cst_24 {dimension_numbers = #tpu.dot_dimension_numbers<[1], [0], [0], [1], [0, 0, 1, 1], [], []>} : vector<8x16xf32>, vector<16x32xf32>, vector<8x32xf32> -> vector<8x32xf32>
    %43 = arith.addf %37, %42 : vector<8x32xf32>
    %44 = vector.extract_strided_slice %6 {offsets = [0, 6, 0], sizes = [8, 1, 16], strides = [1, 1, 1]} : vector<8x8x32xf32> to vector<8x1x16xf32>
    %45 = vector.shape_cast %44 : vector<8x1x16xf32> to vector<8x16xf32>
    %c6 = arith.constant 6 : index
    %c0_25 = arith.constant 0 : index
    %c0_26 = arith.constant 0 : index
    %46 = vector.load %arg5[%c6, %c0_25, %c0_26] : memref<8x16x32xf32, #tpu.memory_space<vmem>>, vector<1x16x32xf32>
    %47 = vector.shape_cast %46 : vector<1x16x32xf32> to vector<16x32xf32>
    %cst_27 = arith.constant dense<0.000000e+00> : vector<8x32xf32>
    %48 = tpu.matmul %45, %47, %cst_27 {dimension_numbers = #tpu.dot_dimension_numbers<[1], [0], [0], [1], [0, 0, 1, 1], [], []>} : vector<8x16xf32>, vector<16x32xf32>, vector<8x32xf32> -> vector<8x32xf32>
    %49 = arith.addf %43, %48 : vector<8x32xf32>
    %50 = vector.extract_strided_slice %6 {offsets = [0, 7, 0], sizes = [8, 1, 16], strides = [1, 1, 1]} : vector<8x8x32xf32> to vector<8x1x16xf32>
    %51 = vector.shape_cast %50 : vector<8x1x16xf32> to vector<8x16xf32>
    %c7 = arith.constant 7 : index
    %c0_28 = arith.constant 0 : index
    %c0_29 = arith.constant 0 : index
    %52 = vector.load %arg5[%c7, %c0_28, %c0_29] : memref<8x16x32xf32, #tpu.memory_space<vmem>>, vector<1x16x32xf32>
    %53 = vector.shape_cast %52 : vector<1x16x32xf32> to vector<16x32xf32>
    %cst_30 = arith.constant dense<0.000000e+00> : vector<8x32xf32>
    %54 = tpu.matmul %51, %53, %cst_30 {dimension_numbers = #tpu.dot_dimension_numbers<[1], [0], [0], [1], [0, 0, 1, 1], [], []>} : vector<8x16xf32>, vector<16x32xf32>, vector<8x32xf32> -> vector<8x32xf32>
    %55 = arith.addf %49, %54 : vector<8x32xf32>
    %c0_31 = arith.constant 0 : index
    %c0_32 = arith.constant 0 : index
    %56 = vector.load %arg6[%c0_31, %c0_32] : memref<1x32xf32, #tpu.memory_space<vmem>>, vector<1x32xf32>
    %57 = vector.broadcast %56 : vector<1x32xf32> to vector<8x32xf32>
    %58 = arith.addf %55, %57 : vector<8x32xf32>
    %cst_33 = arith.constant 0.000000e+00 : f32
    %59 = vector.broadcast %cst_33 : f32 to vector<8x32xf32>
    %60 = arith.maximumf %58, %59 : vector<8x32xf32>
    %c0_34 = arith.constant 0 : index
    %c0_35 = arith.constant 0 : index
    %61 = vector.load %arg7[%c0_34, %c0_35] : memref<32x8xf32, #tpu.memory_space<vmem>>, vector<32x8xf32>
    %cst_36 = arith.constant dense<0.000000e+00> : vector<8x8xf32>
    %62 = tpu.matmul %60, %61, %cst_36 {dimension_numbers = #tpu.dot_dimension_numbers<[1], [0], [0], [1], [0, 0, 1, 1], [], []>} : vector<8x32xf32>, vector<32x8xf32>, vector<8x8xf32> -> vector<8x8xf32>
    %c0_37 = arith.constant 0 : index
    %c0_38 = arith.constant 0 : index
    %63 = vector.load %arg8[%c0_37, %c0_38] : memref<1x8xf32, #tpu.memory_space<vmem>>, vector<1x8xf32>
    %64 = vector.broadcast %63 : vector<1x8xf32> to vector<8x8xf32>
    %65 = arith.addf %62, %64 : vector<8x8xf32>
    %cst_39 = arith.constant 0.000000e+00 : f32
    %66 = vector.broadcast %cst_39 : f32 to vector<8x8xf32>
    %67 = arith.maximumf %65, %66 : vector<8x8xf32>
    %c0_40 = arith.constant 0 : index
    %c0_41 = arith.constant 0 : index
    %68 = vector.load %arg2[%c0_40, %c0_41] : memref<8x8xf32, #tpu.memory_space<vmem>>, vector<8x8xf32>
    %cst_42 = arith.constant 5.000000e-01 : f32
    %69 = vector.broadcast %cst_42 : f32 to vector<8x8xf32>
    %70 = arith.cmpf ogt, %68, %69 : vector<8x8xf32>
    %cst_43 = arith.constant -1.000000e+09 : f32
    %71 = vector.broadcast %cst_43 : f32 to vector<8x8xf32>
    %72 = arith.select %70, %67, %71 : vector<8x8xi1>, vector<8x8xf32>
    %cst_44 = arith.constant dense<0xFF800000> : vector<8xf32>
    %73 = vector.multi_reduction <maximumf>, %72, %cst_44 [1] : vector<8x8xf32> to vector<8xf32>
    %74 = vector.shape_cast %73 : vector<8xf32> to vector<8x1xf32>
    %75 = vector.broadcast %74 : vector<8x1xf32> to vector<8x8xf32>
    %76 = arith.subf %72, %75 : vector<8x8xf32>
    %77 = math.exp %76 : vector<8x8xf32>
    %cst_45 = arith.constant dense<0.000000e+00> : vector<8xf32>
    %78 = vector.multi_reduction <add>, %77, %cst_45 [1] : vector<8x8xf32> to vector<8xf32>
    %79 = vector.shape_cast %78 : vector<8xf32> to vector<8x1xf32>
    %80 = vector.broadcast %79 : vector<8x1xf32> to vector<8x8xf32>
    %81 = arith.divf %77, %80 : vector<8x8xf32>
    %cst_46 = arith.constant 0.000000e+00 : f32
    %82 = vector.broadcast %cst_46 : f32 to vector<8x16xf32>
    %83 = vector.extract_strided_slice %81 {offsets = [0, 0], sizes = [8, 1], strides = [1, 1]} : vector<8x8xf32> to vector<8x1xf32>
    %84 = vector.extract_strided_slice %6 {offsets = [0, 0, 16], sizes = [8, 1, 16], strides = [1, 1, 1]} : vector<8x8x32xf32> to vector<8x1x16xf32>
    %85 = vector.shape_cast %84 : vector<8x1x16xf32> to vector<8x16xf32>
    %86 = vector.broadcast %83 : vector<8x1xf32> to vector<8x16xf32>
    %87 = arith.mulf %86, %85 : vector<8x16xf32>
    %88 = arith.addf %82, %87 : vector<8x16xf32>
    %89 = vector.extract_strided_slice %81 {offsets = [0, 1], sizes = [8, 1], strides = [1, 1]} : vector<8x8xf32> to vector<8x1xf32>
    %90 = vector.extract_strided_slice %6 {offsets = [0, 1, 16], sizes = [8, 1, 16], strides = [1, 1, 1]} : vector<8x8x32xf32> to vector<8x1x16xf32>
    %91 = vector.shape_cast %90 : vector<8x1x16xf32> to vector<8x16xf32>
    %92 = vector.broadcast %89 : vector<8x1xf32> to vector<8x16xf32>
    %93 = arith.mulf %92, %91 : vector<8x16xf32>
    %94 = arith.addf %88, %93 : vector<8x16xf32>
    %95 = vector.extract_strided_slice %81 {offsets = [0, 2], sizes = [8, 1], strides = [1, 1]} : vector<8x8xf32> to vector<8x1xf32>
    %96 = vector.extract_strided_slice %6 {offsets = [0, 2, 16], sizes = [8, 1, 16], strides = [1, 1, 1]} : vector<8x8x32xf32> to vector<8x1x16xf32>
    %97 = vector.shape_cast %96 : vector<8x1x16xf32> to vector<8x16xf32>
    %98 = vector.broadcast %95 : vector<8x1xf32> to vector<8x16xf32>
    %99 = arith.mulf %98, %97 : vector<8x16xf32>
    %100 = arith.addf %94, %99 : vector<8x16xf32>
    %101 = vector.extract_strided_slice %81 {offsets = [0, 3], sizes = [8, 1], strides = [1, 1]} : vector<8x8xf32> to vector<8x1xf32>
    %102 = vector.extract_strided_slice %6 {offsets = [0, 3, 16], sizes = [8, 1, 16], strides = [1, 1, 1]} : vector<8x8x32xf32> to vector<8x1x16xf32>
    %103 = vector.shape_cast %102 : vector<8x1x16xf32> to vector<8x16xf32>
    %104 = vector.broadcast %101 : vector<8x1xf32> to vector<8x16xf32>
    %105 = arith.mulf %104, %103 : vector<8x16xf32>
    %106 = arith.addf %100, %105 : vector<8x16xf32>
    %107 = vector.extract_strided_slice %81 {offsets = [0, 4], sizes = [8, 1], strides = [1, 1]} : vector<8x8xf32> to vector<8x1xf32>
    %108 = vector.extract_strided_slice %6 {offsets = [0, 4, 16], sizes = [8, 1, 16], strides = [1, 1, 1]} : vector<8x8x32xf32> to vector<8x1x16xf32>
    %109 = vector.shape_cast %108 : vector<8x1x16xf32> to vector<8x16xf32>
    %110 = vector.broadcast %107 : vector<8x1xf32> to vector<8x16xf32>
    %111 = arith.mulf %110, %109 : vector<8x16xf32>
    %112 = arith.addf %106, %111 : vector<8x16xf32>
    %113 = vector.extract_strided_slice %81 {offsets = [0, 5], sizes = [8, 1], strides = [1, 1]} : vector<8x8xf32> to vector<8x1xf32>
    %114 = vector.extract_strided_slice %6 {offsets = [0, 5, 16], sizes = [8, 1, 16], strides = [1, 1, 1]} : vector<8x8x32xf32> to vector<8x1x16xf32>
    %115 = vector.shape_cast %114 : vector<8x1x16xf32> to vector<8x16xf32>
    %116 = vector.broadcast %113 : vector<8x1xf32> to vector<8x16xf32>
    %117 = arith.mulf %116, %115 : vector<8x16xf32>
    %118 = arith.addf %112, %117 : vector<8x16xf32>
    %119 = vector.extract_strided_slice %81 {offsets = [0, 6], sizes = [8, 1], strides = [1, 1]} : vector<8x8xf32> to vector<8x1xf32>
    %120 = vector.extract_strided_slice %6 {offsets = [0, 6, 16], sizes = [8, 1, 16], strides = [1, 1, 1]} : vector<8x8x32xf32> to vector<8x1x16xf32>
    %121 = vector.shape_cast %120 : vector<8x1x16xf32> to vector<8x16xf32>
    %122 = vector.broadcast %119 : vector<8x1xf32> to vector<8x16xf32>
    %123 = arith.mulf %122, %121 : vector<8x16xf32>
    %124 = arith.addf %118, %123 : vector<8x16xf32>
    %125 = vector.extract_strided_slice %81 {offsets = [0, 7], sizes = [8, 1], strides = [1, 1]} : vector<8x8xf32> to vector<8x1xf32>
    %126 = vector.extract_strided_slice %6 {offsets = [0, 7, 16], sizes = [8, 1, 16], strides = [1, 1, 1]} : vector<8x8x32xf32> to vector<8x1x16xf32>
    %127 = vector.shape_cast %126 : vector<8x1x16xf32> to vector<8x16xf32>
    %128 = vector.broadcast %125 : vector<8x1xf32> to vector<8x16xf32>
    %129 = arith.mulf %128, %127 : vector<8x16xf32>
    %130 = arith.addf %124, %129 : vector<8x16xf32>
    %c0_47 = arith.constant 0 : index
    %c0_48 = arith.constant 0 : index
    %131 = vector.load %arg9[%c0_47, %c0_48] : memref<16x1xf32, #tpu.memory_space<vmem>>, vector<16x1xf32>
    %cst_49 = arith.constant dense<0.000000e+00> : vector<8x1xf32>
    %132 = tpu.matmul %130, %131, %cst_49 {dimension_numbers = #tpu.dot_dimension_numbers<[1], [0], [0], [1], [0, 0, 1, 1], [], []>} : vector<8x16xf32>, vector<16x1xf32>, vector<8x1xf32> -> vector<8x1xf32>
    %c0_50 = arith.constant 0 : index
    %c0_51 = arith.constant 0 : index
    %133 = vector.load %arg10[%c0_50, %c0_51] : memref<1x1xf32, #tpu.memory_space<vmem>>, vector<1x1xf32>
    %134 = vector.broadcast %133 : vector<1x1xf32> to vector<8x1xf32>
    %135 = arith.addf %132, %134 : vector<8x1xf32>
    %136 = arith.negf %135 : vector<8x1xf32>
    %137 = math.exp %136 : vector<8x1xf32>
    %cst_52 = arith.constant 1.000000e+00 : f32
    %138 = vector.broadcast %cst_52 : f32 to vector<8x1xf32>
    %139 = arith.addf %138, %137 : vector<8x1xf32>
    %140 = arith.divf %138, %139 : vector<8x1xf32>
    %c0_53 = arith.constant 0 : index
    %c0_54 = arith.constant 0 : index
    %141 = vector.load %arg11[%c0_53, %c0_54] : memref<8x1xf32, #tpu.memory_space<vmem>>, vector<8x1xf32>
    tpu.vector_store %arg11[%c0_53, %c0_54], %140 {strides = array<i32>} : memref<8x1xf32, #tpu.memory_space<vmem>>, vector<8x1xf32>,
    return
  }
  func.func @transform_0(%arg0: i32) -> (i32, i32) {
    %c0_i32 = arith.constant 0 : i32
    %c0_i32_0 = arith.constant 0 : i32
    return %arg0, %c0_i32 : i32, i32
  }
  func.func @transform_1(%arg0: i32) -> (i32, i32) {
    %c0_i32 = arith.constant 0 : i32
    %c0_i32_0 = arith.constant 0 : i32
    return %arg0, %c0_i32 : i32, i32
  }
  func.func @transform_2(%arg0: i32) -> (i32, i32) {
    %c0_i32 = arith.constant 0 : i32
    %c0_i32_0 = arith.constant 0 : i32
    %c0_i32_1 = arith.constant 0 : i32
    return %c0_i32, %c0_i32_0 : i32, i32
  }
  func.func @transform_3(%arg0: i32) -> (i32, i32) {
    %c0_i32 = arith.constant 0 : i32
    %c0_i32_0 = arith.constant 0 : i32
    %c0_i32_1 = arith.constant 0 : i32
    return %c0_i32, %c0_i32_0 : i32, i32
  }
  func.func @transform_4(%arg0: i32) -> (i32, i32, i32) {
    %c0_i32 = arith.constant 0 : i32
    %c0_i32_0 = arith.constant 0 : i32
    %c0_i32_1 = arith.constant 0 : i32
    %c0_i32_2 = arith.constant 0 : i32
    return %c0_i32, %c0_i32_0, %c0_i32_1 : i32, i32, i32
  }
  func.func @transform_5(%arg0: i32) -> (i32, i32) {
    %c0_i32 = arith.constant 0 : i32
    %c0_i32_0 = arith.constant 0 : i32
    %c0_i32_1 = arith.constant 0 : i32
    return %c0_i32, %c0_i32_0 : i32, i32
  }
  func.func @transform_6(%arg0: i32) -> (i32, i32) {
    %c0_i32 = arith.constant 0 : i32
    %c0_i32_0 = arith.constant 0 : i32
    %c0_i32_1 = arith.constant 0 : i32
    return %c0_i32, %c0_i32_0 : i32, i32
  }
  func.func @transform_7(%arg0: i32) -> (i32, i32) {
    %c0_i32 = arith.constant 0 : i32
    %c0_i32_0 = arith.constant 0 : i32
    %c0_i32_1 = arith.constant 0 : i32
    return %c0_i32, %c0_i32_0 : i32, i32
  }
  func.func @transform_8(%arg0: i32) -> (i32, i32) {
    %c0_i32 = arith.constant 0 : i32
    %c0_i32_0 = arith.constant 0 : i32
    %c0_i32_1 = arith.constant 0 : i32
    return %c0_i32, %c0_i32_0 : i32, i32
  }
  func.func @transform_9(%arg0: i32) -> (i32, i32) {
    %c0_i32 = arith.constant 0 : i32
    %c0_i32_0 = arith.constant 0 : i32
    %c0_i32_1 = arith.constant 0 : i32
    return %c0_i32, %c0_i32_0 : i32, i32
  }
  func.func @transform_10(%arg0: i32) -> (i32, i32) {
    %c0_i32 = arith.constant 0 : i32
    %c0_i32_0 = arith.constant 0 : i32
    return %arg0, %c0_i32 : i32, i32
  }
}

</mosaic_0001>

<bundles_post_ra>
// kernel: tpu_custom_call.1
= control target key start
LH: loop header
LB: loop body
LE: loop exit
PB: predicated region body
PF: predicated region fallthrough
CT: control target
= control target key end

     0   :  { %s1846_s0 = inlined_call_operand.vmem [shape: f32[64,24], index: 0, kind: input, shape index: {}]   ;;  %s1847_s1 = inlined_call_operand.hbm [shape: f32[8,8], index: 1, kind: input, shape index: {}]   ;;  %s1848_s2 = inlined_call_operand.vmem [shape: f32[24,32], index: 2, kind: input, shape index: {}]   ;;  %s1849_s3 = inlined_call_operand.vmem [shape: f32[1,32], index: 3, kind: input, shape index: {}]   ;;  %s1850_s4 = inlined_call_operand.vmem [shape: f32[8,16,32], index: 4, kind: input, shape index: {}]   ;;  %s1851_s5 = inlined_call_operand.vmem [shape: f32[1,32], index: 5, kind: input, shape index: {}]   ;;  %s1852_s6 = inlined_call_operand.vmem [shape: f32[32,8], index: 6, kind: input, shape index: {}]   ;;  %s1853_s7 = inlined_call_operand.vmem [shape: f32[1,8], index: 7, kind: input, shape index: {}]   ;;  %s1854_s8 = inlined_call_operand.vmem [shape: f32[16,1], index: 8, kind: input, shape index: {}]   ;;  %s1855_s9 = inlined_call_operand.<no memory space> [shape: f32[1,1], index: 9, kind: input, shape index: {}]   ;;  %s1856_s10 = inlined_call_operand.vmem [shape: f32[8,1], index: 10, kind: output, shape index: {}]  }
   0x1   :  { %v15_v0 = vstv %s1855_s9 }
   0x2   :  { %16 = vst [vmem:[#allocation2] sm:$0x1] %v15_v0 }
   0x3   :  { %17 = vsyncpa [#allocation4], 0  ;;  %s1431_s15 = smov [#allocation3]  }
   0x4   :  { %s26_s16 = sshll.u32 %s1431_s15, 4  ;;  %s27_s16 = int_to_ptr.vmem [resolvable:$true] %s26_s16 }
   0x5   :  { %s1417_s17 = scalar_lea.vmem %s27_s16, 128  ;;  %p1422_p1 = scmp.lt.s32.totalorder %s27_s16, %s27_s16 }
   0x6   :  { %p1418_p0 = scmp.ne.s32.totalorder %s27_s16, %s1417_s17  ;;  %p1423_p2 = scmp.lt.s32.totalorder %s1417_s17, %s1417_s17 }
   0x8   :  { %p1424_p3 = por %p1423_p2, %p1422_p1 }
   0xa   :  { %p1425_p4 = pnand %p1424_p3, %p1418_p0 }
   0xc   :  { %1428 = shalt.err (!%p1425_p4)
}
   0xd   :  { %29 = dma.hbm_to_vmem [thread:$0]  %s1847_s1, 128, %s27_s16, [#allocation4]  }
   0xe   :  { %1429 = dma.done.wait [#allocation4], 128  }
   0xf   :  { %1430 = vsyncadd [#allocation4], 4294967168  ;;  %vm67_vm0 = vcmask 195584   ;;  %v59_v1 = vld [vmem:[%s1848_s2 + $0x10] sm:$0xff]  ;;  %v58_v2 = vld [vmem:[%s1848_s2 + $0x8] sm:$0xff]  ;;  %v1432_v14 = vmov 0.0  }
  0x10   :  { %1288 = vmatprep.subr.mxu0 %v59_v1  ;;  %v49_v3 = vld [vmem:[%s1846_s0] sm:$0xff]  ;;  %v50_v5 = vld [vmem:[%s1846_s0 + $0x8] sm:$0xff]  ;;  %v51_v6 = vld [vmem:[%s1846_s0 + $0x10] sm:$0xff]  ;;  %1306 = vmatprep.subr.mxu1 %v1432_v14  ;;  %vm1433_vm1 = vmmov 0   ;;  %vm211_vm2 = vcmask 1041409   ;;  %vm214_vm3 = vcmask 1042434  }
  0x11   :  { %1289 = vmatpush3.msra.mxu0 %v59_v1  ;;  %v57_v4 = vld [vmem:[%s1848_s2] sm:$0xff]  ;;  %1294 = vmatprep.mubr.msk.f32.mxu0 %vm67_vm0, %v49_v3  ;;  %v52_v7 = vld [vmem:[%s1846_s0 + $0x18] sm:$0xff]  ;;  %v54_v9 = vld [vmem:[%s1846_s0 + $0x28] sm:$0xff]  ;;  %vm217_vm4 = vcmask 1043459   ;;  %vm220_vm5 = vcmask 1044484   ;;  %vm223_vm6 = vcmask 1045509  }
  0x12   :  { %1290 = vmatprep.subr.mxu0 %v58_v2  ;;  %v53_v8 = vld [vmem:[%s1846_s0 + $0x20] sm:$0xff]  ;;  %v55_v10 = vld [vmem:[%s1846_s0 + $0x30] sm:$0xff]  ;;  %v56_v11 = vld [vmem:[%s1846_s0 + $0x38] sm:$0xff]  ;;  %1310 = vmatprep.mubr.msk.f32.mxu1 %vm1433_vm1, %v1432_v14  ;;  %vm226_vm7 = vcmask 1046534   ;;  %vm231_vm8 = vcmask 130048   ;;  %vm229_vm9 = vcmask 1047559  }
  0x13   :  { %1291 = vmatpush3.msra.mxu0 %v58_v2  ;;  %v1218_v12 = vld [vmem:[%s1850_s4 + $0x18] sm:$0xff]  ;;  %v1217_v15 = vld [vmem:[%s1850_s4 + $0x10] sm:$0xff]  ;;  %v1208_v17 = vld [vmem:[%s1849_s3] ss:$0 sm:$0xff]  ;;  %vm950_vm10 = vcmask 261120   ;;  %vm1028_vm12 = vcmask 64512  }
  0x14   :  { %1292 = vmatprep.subr.mxu0 %v57_v4  ;;  %v1231_v13 = vld [vmem:[%s1850_s4 + $0x58] sm:$0xff]  ;;  %1307 = vmatpush3.msra.mxu1 %v1218_v12  ;;  %v1230_v16 = vld [vmem:[%s1850_s4 + $0x50] sm:$0xff]  ;;  %vm1201_vm13 = vcmask 7168  }
  0x15   :  { %1293 = vmatpush3.msra.mxu0 %v57_v4  ;;  %1308 = vmatprep.subr.mxu1 %v1432_v14 }
  0x16   :  { %1295 = vmatmul.mubr.msk.f32.vlgmr.msra.gmra.mxu0 %vm67_vm0, %v50_v5  ;;  %1341 = vmatprep.subr.mxu0 %v1432_v14 }
  0x17   :  { %1297 = vmatprep.mubr.msk.f32.mxu0 %vm67_vm0, %v51_v6  ;;  %1342 = vmatpush3.msra.mxu0 %v1231_v13 }
  0x18   :  { %1343 = vmatprep.subr.mxu0 %v1432_v14  ;;  %1309 = vmatpush3.msra.mxu1 %v1217_v15 }
  0x19   :  { %1313 = vmatprep.subr.mxu1 %v1432_v14  ;;  %1344 = vmatpush3.msra.mxu0 %v1230_v16 }
  0x1a   :  { %1298 = vmatmul.mubr.msk.f32.gmra.mxu0 %vm67_vm0, %v52_v7  ;;  %1355 = vmatprep.subr.mxu0 %v1432_v14 }
  0x1b   :  { %1300 = vmatprep.mubr.msk.f32.mxu0 %vm67_vm0, %v53_v8 }
  0x1e   :  { %1301 = vmatmul.mubr.msk.f32.gmra.mxu0 %vm67_vm0, %v54_v9 }
  0x1f   :  { %1303 = vmatprep.mubr.msk.f32.mxu0 %vm67_vm0, %v55_v10 }
  0x22   :  { %1304 = vmatmul.mubr.msk.f32.gmra.mxu0 %vm67_vm0, %v56_v11 }
  0x23   :  { %1345 = vmatprep.mubr.msk.f32.mxu0 %vm1433_vm1, %v1432_v14 }
  0xd6   :  { %v1296_v18 = vpop.f32.mrf.mxu0 }
  0xd7   :  { %v1570_v19 = vadd.f32 %v1296_v18, %v1208_v17 }
  0xd8   :  { %v158_v20 = vpop.f32.mrf.mxu0 }
  0xd9   :  { %v1572_v21 = vadd.f32 %v1208_v17, %v158_v20  ;;  %v304_v22 = vrot.slane %v1570_v19, 7  ;;  %v664_v27 = vrot.slane %v1570_v19, 4  ;;  %v844_v30 = vrot.slane %v1570_v19, 6 }
  0xda   :  { %v1299_v23 = vpop.f32.mrf.mxu0  ;;  %v394_v31 = vrot.slane %v1570_v19, 1  ;;  %v484_v32 = vrot.slane %v1570_v19, 2 }
  0xdb   :  { %v1575_v24 = vadd.f32 %v1299_v23, %v1208_v17  ;;  %v210_v25 = vrot.slane %v1572_v21, 1  ;;  %v663_v26 = vrot.slane %v1572_v21, 5  ;;  %v843_v29 = vrot.slane %v1572_v21, 7 }
  0xdc   :  { %v168_v28 = vpop.f32.mrf.mxu0  ;;  %v305_v34 = vsel %vm211_vm2, %v304_v22, %v1572_v21  ;;  %v393_v35 = vrot.slane %v1572_v21, 2  ;;  %v483_v36 = vrot.slane %v1572_v21, 3 }
  0xdd   :  { %v1584_v33 = vadd.f32 %v1208_v17, %v168_v28  ;;  %v212_v38 = vsel %vm211_vm2, %v1570_v19, %v210_v25  ;;  %v216_v39 = vrot.slane %v1575_v24, 6  ;;  %v665_v40 = vsel %vm211_vm2, %v664_v27, %v663_v26  ;;  %v198_v26 = vld [vmem:[%s1850_s4 + $0x8] sm:$0xff]  ;;  %v1237_v28 = vld [vmem:[%s1850_s4 + $0x78] sm:$0xff] }
  0xde   :  { %v1302_v37 = vpop.f32.mrf.mxu0  ;;  %v668_v41 = vrot.slane %v1575_v24, 2  ;;  %v308_v47 = vrot.slane %v1575_v24, 5  ;;  %v845_v48 = vsel %vm211_vm2, %v844_v30, %v843_v29  ;;  %v848_v50 = vrot.slane %v1575_v24, 4 }
  0xdf   :  { %v1595_v42 = vadd.f32 %v1302_v37, %v1208_v17  ;;  %v213_v43 = vrot.slane %v1584_v33, 7  ;;  %v666_v44 = vrot.slane %v1584_v33, 3  ;;  %v306_v45 = vrot.slane %v1584_v33, 6 }
  0xe0   :  { %v178_v46 = vpop.f32.mrf.mxu0  ;;  %v846_v49 = vrot.slane %v1584_v33, 5  ;;  %v395_v54 = vsel %vm211_vm2, %v394_v31, %v393_v35  ;;  %v397_v59 = vrot.slane %v1575_v24, 7 }
  0xe1   :  { %v1604_v51 = vadd.f32 %v1208_v17, %v178_v46  ;;  %v215_v52 = vsel %vm214_vm3, %v213_v43, %v212_v38  ;;  %v667_v53 = vsel %vm214_vm3, %v666_v44, %v665_v40  ;;  %v222_v57 = vrot.slane %v1595_v42, 4  ;;  %v197_v38 = vld [vmem:[%s1850_s4] sm:$0xff]  ;;  %v1236_v44 = vld [vmem:[%s1850_s4 + $0x70] sm:$0xff] }
  0xe2   :  { %v1305_v55 = vpop.f32.mrf.mxu0  ;;  %v218_v56 = vsel %vm217_vm4, %v216_v39, %v215_v52  ;;  %v307_v58 = vsel %vm214_vm3, %v306_v45, %v305_v34  ;;  %v669_v62 = vsel %vm217_vm4, %v668_v41, %v667_v53  ;;  %v312_v3 = vrot.slane %v1595_v42, 3 }
  0xe3   :  { %v1613_v60 = vadd.f32 %v1305_v55, %v1208_v17  ;;  %v219_v61 = vrot.slane %v1604_v51, 5  ;;  %v670_v63 = vrot.slane %v1604_v51, 1  ;;  %v309_v1 = vsel %vm217_vm4, %v308_v47, %v307_v58 }
  0xe4   :  { %v188_v0 = vpop.f32.mrf.mxu0  ;;  %v310_v2 = vrot.slane %v1604_v51, 4  ;;  %v847_v4 = vsel %vm214_vm3, %v846_v49, %v845_v48  ;;  %v850_v8 = vrot.slane %v1604_v51, 3  ;;  %v852_v12 = vrot.slane %v1595_v42, 2 }
  0xe5   :  { %v1622_v5 = vadd.f32 %v1208_v17, %v188_v0  ;;  %v221_v6 = vsel %vm220_vm5, %v219_v61, %v218_v56  ;;  %v671_v7 = vsel %vm220_vm5, %v670_v63, %v669_v62  ;;  %v228_v10 = vrot.slane %v1613_v60, 2  ;;  %v1221_v62 = vld [vmem:[%s1850_s4 + $0x20] sm:$0xff] }
  0xe6   :  { %v224_v9 = vsel %vm223_vm6, %v222_v57, %v221_v6  ;;  %v311_v11 = vsel %vm220_vm5, %v310_v2, %v309_v1  ;;  %v672_v15 = vsel %vm223_vm6, %v1595_v42, %v671_v7  ;;  %v675_v18 = vrot.slane %v1613_v60, 6 }
  0xe7   :  { %v225_v13 = vrot.slane %v1622_v5, 3  ;;  %v673_v16 = vrot.slane %v1622_v5, 7  ;;  %v314_v17 = vrot.slane %v1622_v5, 2  ;;  %v313_v20 = vsel %vm223_vm6, %v312_v3, %v311_v11 }
  0xe8   :  { %v849_v22 = vsel %vm217_vm4, %v848_v50, %v847_v4  ;;  %v854_v23 = vrot.slane %v1622_v5, 1  ;;  %v396_v30 = vsel %vm214_vm3, %v1584_v33, %v395_v54  ;;  %v316_v39 = vrot.slane %v1613_v60, 1  ;;  %v1222_v54 = vld [vmem:[%s1850_s4 + $0x28] sm:$0xff] }
  0xe9   :  { %v227_v25 = vsel %vm226_vm7, %v225_v13, %v224_v9  ;;  %v674_v27 = vsel %vm226_vm7, %v673_v16, %v672_v15  ;;  %v851_v29 = vsel %vm220_vm5, %v850_v8, %v849_v22  ;;  %v315_v35 = vsel %vm226_vm7, %v314_v17, %v313_v20  ;;  %v1225_v9 = vld [vmem:[%s1850_s4 + $0x38] sm:$0xff] }
  0xea   :  { %v1652_v31 = vsel %vm229_vm9, %v228_v10, %v227_v25  ;;  %v1655_v34 = vsel %vm229_vm9, %v675_v18, %v674_v27  ;;  %v853_v37 = vsel %vm223_vm6, %v852_v12, %v851_v29  ;;  %v399_v41 = vrot.slane %v1604_v51, 6 }
  0xeb   :  { %1311 = vmatmul.mubr.msk.f32.vlgmr.msra.gmra.mxu1 %vm231_vm8, %v1652_v31  ;;  %1346 = vmatmul.mubr.msk.f32.vlgmr.msra.gmra.mxu0 %vm231_vm8, %v1655_v34  ;;  %v855_v40 = vsel %vm226_vm7, %v854_v23, %v853_v37  ;;  %v573_v43 = vrot.slane %v1572_v21, 4  ;;  %v398_v45 = vsel %vm217_vm4, %v397_v59, %v396_v30  ;;  %v401_v46 = vrot.slane %v1595_v42, 5  ;;  %v1228_v23 = vld [vmem:[%s1850_s4 + $0x48] sm:$0xff] }
  0xec   :  { %1314 = vmatpush3.msra.mxu1 %v198_v26  ;;  %1356 = vmatpush3.msra.mxu0 %v1237_v28  ;;  %v403_v47 = vrot.slane %v1622_v5, 4  ;;  %v486_v48 = vrot.slane %v1584_v33, 1  ;;  %v1680_v49 = vsel %vm229_vm9, %v316_v39, %v315_v35  ;;  %v400_v50 = vsel %vm220_vm5, %v399_v41, %v398_v45  ;;  %v1227_v28 = vld [vmem:[%s1850_s4 + $0x40] sm:$0xff]  ;;  %v941_v41 = vld [vmem:[%s1852_s6 + $0x10] sm:$0xff] }
  0xed   :  { %1315 = vmatprep.subr.mxu1 %v1432_v14  ;;  %1357 = vmatprep.subr.mxu0 %v1432_v14  ;;  %v485_v52 = vsel %vm211_vm2, %v484_v32, %v483_v36  ;;  %v489_v53 = vrot.slane %v1604_v51, 7  ;;  %v1696_v55 = vsel %vm229_vm9, %v1613_v60, %v855_v40  ;;  %v402_v56 = vsel %vm223_vm6, %v401_v46, %v400_v50  ;;  %v1233_v39 = vld [vmem:[%s1850_s4 + $0x60] sm:$0xff] }
  0xee   :  { %1316 = vmatpush3.msra.mxu1 %v197_v38  ;;  %1317 = vmatprep.mubr.msk.f32.mxu1 %vm1433_vm1, %v1432_v14  ;;  %v487_v57 = vsel %vm214_vm3, %v486_v48, %v485_v52  ;;  %v574_v32 = vrot.slane %v1570_v19, 3  ;;  %v404_v36 = vsel %vm226_vm7, %v403_v47, %v402_v56  ;;  %v405_v58 = vrot.slane %v1613_v60, 3 }
  0xef   :  { %1320 = vmatprep.subr.mxu1 %v1432_v14  ;;  %1358 = vmatpush3.msra.mxu0 %v1236_v44  ;;  %v488_v59 = vsel %vm217_vm4, %v1575_v24, %v487_v57  ;;  %v576_v61 = vrot.slane %v1584_v33, 2  ;;  %v493_v0 = vrot.slane %v1622_v5, 5  ;;  %v578_v2 = vrot.slane %v1575_v24, 1  ;;  %v939_v44 = vld [vmem:[%s1852_s6] sm:$0xff] }
  0xf0   :  { %1359 = vmatprep.mubr.msk.f32.mxu0 %vm1433_vm1, %v1432_v14  ;;  %1318 = vmatmul.mubr.msk.f32.vlgmr.msra.gmra.mxu1 %vm231_vm8, %v1680_v49  ;;  %v490_v63 = vsel %vm220_vm5, %v489_v53, %v488_v59  ;;  %v575_v1 = vsel %vm211_vm2, %v574_v32, %v573_v43  ;;  %v491_v3 = vrot.slane %v1595_v42, 6  ;;  %v753_v6 = vrot.slane %v1572_v21, 6  ;;  %v940_v43 = vld [vmem:[%s1852_s6 + $0x8] sm:$0xff] }
  0xf1   :  { %1321 = vmatpush3.msra.mxu1 %v1222_v54  ;;  %1360 = vmatmul.mubr.msk.f32.vlgmr.msra.gmra.mxu0 %vm231_vm8, %v1696_v55  ;;  %v577_v4 = vsel %vm214_vm3, %v576_v61, %v575_v1  ;;  %v754_v7 = vrot.slane %v1570_v19, 5  ;;  %v1728_v8 = vsel %vm229_vm9, %v405_v58, %v404_v36  ;;  %v581_v11 = vrot.slane %v1595_v42, 7 }
  0xf2   :  { %1322 = vmatprep.subr.mxu1 %v1432_v14  ;;  %1324 = vmatprep.mubr.msk.f32.mxu1 %vm1433_vm1, %v1432_v14  ;;  %v579_v10 = vsel %vm217_vm4, %v578_v2, %v577_v4  ;;  %v756_v21 = vrot.slane %v1584_v33, 4  ;;  %v492_v19 = vsel %vm223_vm6, %v491_v3, %v490_v63  ;;  %v758_v13 = vrot.slane %v1575_v24, 3  ;;  %v1224_v33 = vld [vmem:[%s1850_s4 + $0x30] sm:$0xff]  ;;  %v1239_v4 = vld [vmem:[%s1851_s5] ss:$0 sm:$0xff]  ;;  %s1436_s5 = smov 112  }
  0xf3   :  { %1323 = vmatpush3.msra.mxu1 %v1221_v62  ;;  %v755_v12 = vsel %vm211_vm2, %v754_v7, %v753_v6  ;;  %v760_v15 = vrot.slane %v1604_v51, 2  ;;  %1373 = vmatprep.subr.mxu0 %v1432_v14  ;;  %v494_v16 = vsel %vm226_vm7, %v493_v0, %v492_v19  ;;  %v580_v17 = vsel %vm220_vm5, %v1604_v51, %v579_v10 }
  0xf4   :  { %1327 = vmatprep.subr.mxu1 %v1432_v14  ;;  %1325 = vmatmul.mubr.msk.f32.vlgmr.msra.gmra.mxu1 %vm231_vm8, %v1728_v8  ;;  %v583_v24 = vrot.slane %v1622_v5, 6  ;;  %v757_v18 = vsel %vm214_vm3, %v756_v21, %v755_v12  ;;  %v495_v20 = vrot.slane %v1613_v60, 4  ;;  %v582_v26 = vsel %vm223_vm6, %v581_v11, %v580_v17  ;;  %v1240_v11 = vld [vmem:[%s1853_s7] ss:$0 sm:$0xff]  ;;  %v1025_v21 = vld [vmem:[#allocation3] sm:$0xff] }
  0xf5   :  { %1328 = vmatpush3.msra.mxu1 %v1225_v9  ;;  %1331 = vmatprep.mubr.msk.f32.mxu1 %vm1433_vm1, %v1432_v14  ;;  %v759_v22 = vsel %vm217_vm4, %v758_v13, %v757_v18  ;;  %v762_v27 = vrot.slane %v1595_v42, 1  ;;  %v585_v30 = vrot.slane %v1613_v60, 5  ;;  %v1234_v42 = vld [vmem:[%s1850_s4 + $0x68] sm:$0xff]  ;;  %v765_v38 = vrot.slane %v1613_v60, 7 }
  0xf6   :  { %1329 = vmatprep.subr.mxu1 %v1432_v14  ;;  %v761_v51 = vsel %vm220_vm5, %v760_v15, %v759_v22  ;;  %1377 = vmatprep.mubr.msk.f32.mxu0 %vm1433_vm1, %v1432_v14  ;;  %v1764_v25 = vsel %vm229_vm9, %v495_v20, %v494_v16  ;;  %v584_v29 = vsel %vm226_vm7, %v583_v24, %v582_v26  ;;  %vm1026_vm11 = vcmp.gt.f32.partialorder %v1025_v21, 0.5 }
  0xf7   :  { %1330 = vmatpush3.msra.mxu1 %v1224_v33  ;;  %v763_v35 = vsel %vm223_vm6, %v762_v27, %v761_v51  ;;  %v1784_v37 = vsel %vm229_vm9, %v585_v30, %v584_v29  ;;  %v1435_v51 = vmov 0   ;;  %v1437_v29 = vmov 1  }
  0xf8   :  { %1334 = vmatprep.subr.mxu1 %v1432_v14  ;;  %1332 = vmatmul.mubr.msk.f32.vlgmr.msra.gmra.mxu1 %vm231_vm8, %v1764_v25  ;;  %v764_v40 = vsel %vm226_vm7, %v1622_v5, %v763_v35  ;;  %v942_v5 = vld [vmem:[%s1852_s6 + $0x18] sm:$0xff]  ;;  %v1438_v30 = vmov 7   ;;  %v1439_v35 = vmov 3  }
  0xf9   :  { %1335 = vmatpush3.msra.mxu1 %v1228_v23  ;;  %1338 = vmatprep.mubr.msk.f32.mxu1 %vm1433_vm1, %v1432_v14  ;;  %v1799_v60 = vsel %vm229_vm9, %v765_v38, %v764_v40  ;;  %v1434_v23 = vmov 2   ;;  %v1441_v38 = vmov 5  }
  0xfa   :  { %1336 = vmatprep.subr.mxu1 %v1432_v14  ;;  %1394 = vset.pattern.permute.xlu0 %v1434_v23 }
  0xfb   :  { %1337 = vmatpush3.msra.mxu1 %v1227_v28  ;;  %1392 = vset.pattern.permute.xlu1 %v1435_v51 }
  0xfc   :  { %1348 = vmatprep.subr.mxu1 %v1432_v14  ;;  %1339 = vmatmul.mubr.msk.f32.vlgmr.msra.gmra.mxu1 %vm231_vm8, %v1784_v37 }
  0xfd   :  { %1349 = vmatpush3.msra.mxu1 %v1234_v42  ;;  %1352 = vmatprep.mubr.msk.f32.mxu1 %vm1433_vm1, %v1432_v14  ;;  %v1440_v42 = vmov 4  }
  0xfe   :  { %1350 = vmatprep.subr.mxu1 %v1432_v14 }
  0xff   :  { %1351 = vmatpush3.msra.mxu1 %v1233_v39  ;;  %v1442_v39 = vmov 6  }
 0x100   :  { %1353 = vmatmul.mubr.msk.f32.vlgmr.msra.gmra.mxu1 %vm231_vm8, %v1799_v60  ;;  %1362 = vmatprep.subr.mxu1 %v1432_v14 }
 0x101   :  { %1370 = vmatprep.mubr.msk.f32.mxu1 %vm1433_vm1, %v1432_v14  ;;  %1363 = vmatpush3.msra.mxu1 %v942_v5 }
 0x102   :  { %1364 = vmatprep.subr.mxu1 %v1432_v14 }
 0x103   :  { %1365 = vmatpush3.msra.mxu1 %v941_v41 }
 0x104   :  { %1366 = vmatprep.subr.mxu1 %v1432_v14 }
 0x105   :  { %1367 = vmatpush3.msra.mxu1 %v940_v43 }
 0x106   :  { %1368 = vmatprep.subr.mxu1 %v1432_v14 }
 0x107   :  { %1369 = vmatpush3.msra.mxu1 %v939_v44 }
 0x1ab   :  { %v300_v45 = vpop.f32.mrf.mxu1  ;;  %v745_v46 = vpop.f32.mrf.mxu0 }
 0x1ad   :  { %v1312_v47 = vpop.f32.mrf.mxu1  ;;  %v1347_v48 = vpop.f32.mrf.mxu0 }
 0x1b0   :  { %v386_v50 = vpop.f32.mrf.mxu1 }
 0x1b1   :  { %v925_v52 = vpop.f32.mrf.mxu0  ;;  %v387_v32 = vadd.f32 %v386_v50, %v300_v45 }
 0x1b2   :  { %v1319_v53 = vpop.f32.mrf.mxu1 }
 0x1b3   :  { %v1361_v54 = vpop.f32.mrf.mxu0 }
 0x1b4   :  { %v475_v56 = vpop.f32.mrf.mxu1 }
 0x1b5   :  { %v479_v58 = vadd.f32 %v475_v56, %v387_v32 }
 0x1b6   :  { %v1326_v57 = vpop.f32.mrf.mxu1 }
 0x1b8   :  { %v565_v36 = vpop.f32.mrf.mxu1 }
 0x1b9   :  { %v569_v61 = vadd.f32 %v565_v36, %v479_v58 }
 0x1ba   :  { %v1333_v59 = vpop.f32.mrf.mxu1 }
 0x1bc   :  { %v655_v62 = vpop.f32.mrf.mxu1 }
 0x1bd   :  { %v659_v63 = vadd.f32 %v655_v62, %v569_v61 }
 0x1be   :  { %v1340_v0 = vpop.f32.mrf.mxu1 }
 0x1bf   :  { %v749_v1 = vadd.f32 %v745_v46, %v659_v63 }
 0x1c0   :  { %v835_v2 = vpop.f32.mrf.mxu1 }
 0x1c1   :  { %v839_v3 = vadd.f32 %v835_v2, %v749_v1  ;;  %v1242_v2 = vld [vmem:[#allocation2] ss:$0 sm:$0xff] }
 0x1c2   :  { %v1354_v6 = vpop.f32.mrf.mxu1 }
 0x1c3   :  { %v929_v7 = vadd.f32 %v925_v52, %v839_v3 }
 0x1c5   :  { %v937_v9 = vadd.f32 %v1239_v4, %v929_v7 }
 0x1c7   :  { %v938_v10 = vmax.f32 %v937_v9, 0.0 }
 0x1c9   :  { %1371 = vmatmul.mubr.msk.f32.vlgmr.msra.gmra.mxu1 %vm950_vm10, %v938_v10 }
 0x289   :  { %v1020_v19 = vpop.f32.mrf.mxu1 }
 0x28a   :  { %v1021_v12 = vadd.f32 %v1240_v11, %v1020_v19 }
 0x28b   :  { %v1372_v13 = vpop.f32.mrf.mxu1 }
 0x28c   :  { %v1024_v15 = vmax.f32 %v1021_v12, 0.0 }
 0x28e   :  { %v1027_v33 = vsel %vm1026_vm11, %v1024_v15, -1e+09 }
 0x28f   :  { %v1029_v16 = vsel %vm1028_vm12, %v1027_v33, -inf }
 0x290   :  { %1030 = vmax.xlane.f32.xlu0 %v1029_v16 }
 0x319   :  { %v1031_v17 = vpop.xlane.xlu0 %1030 }
 0x31a   :  { %v1032_v24 = vsub.f32 %v1027_v33, %v1031_v17 }
 0x31c   :  { %v1033_v18 = vmul.f32 1.442695, %v1032_v24 }
 0x31e   :  { %1401 = vpow2.f32 %v1033_v18 }
 0x32b   :  { %v1402_v20 = vpop.eup %1401 }
 0x32c   :  { %v1035_v22 = vsel %vm1028_vm12, %v1402_v20, 0.0 }
 0x32d   :  { %1036 = vadd.xlane.f32.xlu0 %v1035_v22 }
 0x3b6   :  { %v1037_v26 = vpop.xlane.xlu0 %1036 }
 0x3b7   :  { %1403 = vrcp.f32 %v1037_v26 }
 0x3c4   :  { %v1404_v27 = vpop.eup %1403 }
 0x3c5   :  { %v1039_v28 = vmul.f32 %v1404_v27, %v1402_v20 }
 0x3c7   :  { %1060 = vperm.xlu0 %1394, %v1039_v28   ;;  %1042 = vperm.xlu1 %1392, %v1039_v28  }
 0x3cb   :  { %1099 = vrot.lane.b32.xlu0 %v1799_v60, %s1436_s5  ;;  %1393 = vset.pattern.permute.xlu1 %v1437_v29 }
 0x3cc   :  { %1051 = vperm.xlu1 %1393, %v1039_v28   ;;  %1400 = vset.pattern.permute.xlu0 %v1438_v30 }
 0x3d0   :  { %1045 = vrot.lane.b32.xlu1 %v1680_v49, %s1436_s5  ;;  %v1113_v49 = vld [vmem:[%s1854_s8] sm:$0xff] }
 0x3d1   :  { %1395 = vset.pattern.permute.xlu1 %v1439_v35 }
 0x3d4   :  { %1054 = vrot.lane.b32.xlu1 %v1652_v31, %s1436_s5  ;;  %v1114_v31 = vld [vmem:[%s1854_s8 + $0x8] sm:$0xff] }
 0x3d5   :  { %1374 = vmatpush3.msra.mxu0 %v1114_v31 }
 0x3d6   :  { %1375 = vmatprep.subr.mxu0 %v1432_v14 }
 0x3d7   :  { %1376 = vmatpush3.msra.mxu0 %v1113_v49 }
 0x3d8   :  { %1063 = vrot.lane.b32.xlu1 %v1728_v8, %s1436_s5 }
 0x3dc   :  { %1072 = vrot.lane.b32.xlu1 %v1764_v25, %s1436_s5 }
 0x3e0   :  { %1081 = vrot.lane.b32.xlu1 %v1784_v37, %s1436_s5 }
 0x3e4   :  { %1069 = vperm.xlu1 %1395, %v1039_v28  }
 0x3e8   :  { %1396 = vset.pattern.permute.xlu1 %v1440_v42 }
 0x3e9   :  { %1078 = vperm.xlu1 %1396, %v1039_v28  }
 0x3ed   :  { %1397 = vset.pattern.permute.xlu1 %v1441_v38 }
 0x3ee   :  { %1087 = vperm.xlu1 %1397, %v1039_v28  }
 0x3f2   :  { %1398 = vset.pattern.permute.xlu1 %v1442_v39 }
 0x3f3   :  { %1096 = vperm.xlu1 %1398, %v1039_v28  }
 0x3f7   :  { %1399 = vset.pattern.permute.xlu1 %v1438_v30 }
 0x3f8   :  { %1105 = vperm.xlu1 %1399, %v1039_v28  }
 0x3fc   :  { %1090 = vrot.lane.b32.xlu1 %v1655_v34, %s1436_s5 }
 0x400   :  { %1108 = vrot.lane.b32.xlu1 %v1696_v55, %s1436_s5 }
 0x442   :  { %v1043_v8 = vpop.permute.xlu1 %1042  ;;  %v1061_v47 = vpop.permute.xlu0 %1060 }
 0x446   :  { %v1100_v58 = vpop.permute.xlu0 %1099 }
 0x447   :  { %v1052_v25 = vpop.permute.xlu1 %1051 }
 0x44b   :  { %v1046_v37 = vpop.permute.xlu1 %1045 }
 0x44c   :  { %v1048_v48 = vmul.f32 %v1046_v37, %v1043_v8 }
 0x44f   :  { %v1055_v40 = vpop.permute.xlu1 %1054 }
 0x450   :  { %v1057_v45 = vmul.f32 %v1055_v40, %v1052_v25 }
 0x452   :  { %v1058_v52 = vadd.f32 %v1057_v45, %v1048_v48 }
 0x453   :  { %v1064_v60 = vpop.permute.xlu1 %1063 }
 0x454   :  { %v1066_v50 = vmul.f32 %v1064_v60, %v1061_v47 }
 0x456   :  { %v1067_v14 = vadd.f32 %v1066_v50, %v1058_v52 }
 0x457   :  { %v1073_v34 = vpop.permute.xlu1 %1072 }
 0x45b   :  { %v1082_v5 = vpop.permute.xlu1 %1081 }
 0x45f   :  { %v1070_v41 = vpop.permute.xlu1 %1069 }
 0x460   :  { %v1075_v55 = vmul.f32 %v1073_v34, %v1070_v41 }
 0x462   :  { %v1076_v56 = vadd.f32 %v1075_v55, %v1067_v14 }
 0x464   :  { %v1079_v43 = vpop.permute.xlu1 %1078 }
 0x465   :  { %v1084_v54 = vmul.f32 %v1082_v5, %v1079_v43 }
 0x467   :  { %v1085_v32 = vadd.f32 %v1084_v54, %v1076_v56 }
 0x469   :  { %v1088_v44 = vpop.permute.xlu1 %1087 }
 0x46e   :  { %v1097_v46 = vpop.permute.xlu1 %1096 }
 0x46f   :  { %v1102_v59 = vmul.f32 %v1100_v58, %v1097_v46 }
 0x473   :  { %v1106_v53 = vpop.permute.xlu1 %1105 }
 0x477   :  { %v1091_v57 = vpop.permute.xlu1 %1090 }
 0x478   :  { %v1093_v36 = vmul.f32 %v1091_v57, %v1088_v44 }
 0x47a   :  { %v1094_v61 = vadd.f32 %v1093_v36, %v1085_v32 }
 0x47b   :  { %v1109_v62 = vpop.permute.xlu1 %1108 }
 0x47c   :  { %v1103_v63 = vadd.f32 %v1102_v59, %v1094_v61  ;;  %v1111_v0 = vmul.f32 %v1109_v62, %v1106_v53 }
 0x47e   :  { %v1112_v1 = vadd.f32 %v1111_v0, %v1103_v63 }
 0x480   :  { %1378 = vmatmul.mubr.msk.f32.vlgmr.msra.gmra.mxu0 %vm231_vm8, %v1112_v1 }
 0x540   :  { %v1191_v3 = vpop.f32.mrf.mxu0 }
 0x541   :  { %v1192_v4 = vadd.f32 %v1242_v2, %v1191_v3 }
 0x542   :  { %v1379_v6 = vpop.f32.mrf.mxu0 }
 0x543   :  { %v1244_v7 = vmul.f32 -1.442695, %v1192_v4 }
 0x545   :  { %1405 = vpow2.f32 %v1244_v7 }
 0x552   :  { %v1406_v9 = vpop.eup %1405 }
 0x553   :  { %v1198_v10 = vadd.f32 1.0, %v1406_v9 }
 0x555   :  { %1407 = vrcp.f32 %v1198_v10 }
 0x562   :  { %v1408_v11 = vpop.eup %1407 }
 0x563   :  { %1202 = vst.msk [vmem:[%s1856_s10] sm:$0xff] %vm1201_vm13, %v1408_v11 }
 0x564   :  { %1207 = vsyncpa [#allocation4], 1 }

</bundles_post_ra>
